<compile_context>
chip_gen: v7x
topology: tpu7x:2x2x1
jax: 0.10.0
libtpu: 0.0.40
codegen_flags: <defaults>
</compile_context>

<pallas_src>
import jax
import jax.numpy as jnp
from jax.experimental import pallas as pl
from jax.experimental.pallas import tpu as pltpu

_LANE = 128      # vreg lane width
_SUBLANE = 8     # f32 sublane quantum


def _cdiv(a, b):
    return -(-a // b)


def _ipg_kernel(x_ref, w_ref, b_ref, o_ref):
    """One (TB, Cin, TS, 128) block of the 1x1, Cout=1 convolution.

    x_ref : VMEM (TB, Cin, TS, 128)  input block (NCHW with HW split as (S,128))
    w_ref : SMEM (Cin,) float32      conv weights  w[0, c, 0, 0]
    b_ref : SMEM (1,)   float32      conv bias
    o_ref : VMEM (TB, 1, TS, 128)    output block
    """
    cin = x_ref.shape[1]
    # Unrolled per-channel multiply-accumulate:
    #  * SMEM scalar * vector is a plain VPU op (no lane-sparse VMEM weight
    #    block, no per-step lane broadcast),
    #  * the channel reduction becomes elementwise adds on fully packed
    #    (TS, 128) vregs instead of a cross-sublane XLU reduce,
    #  * the f32 upcast happens one channel tile at a time (low vreg pressure).
    acc = x_ref[:, 0, :, :].astype(jnp.float32) * w_ref[0]
    for c in range(1, cin):
        acc = acc + x_ref[:, c, :, :].astype(jnp.float32) * w_ref[c]
    o_ref[:, 0, :, :] = (acc + b_ref[0]).astype(o_ref.dtype)


def _choose_tiles(batch, cin, s_total, in_itemsize, out_itemsize,
                  target_step_bytes=6 << 20):
    """Pick (TB, TS) so each grid step moves ~target_step_bytes of HBM traffic.

    Per-grid-step fixed cost is ~0.35 us, so blocks must be O(MiB) to reach the
    HBM roofline on every generation (most important on v7x's 3.2 TB/s HBM).
    Double-buffered VMEM is ~2 * step_bytes (~12 MiB at the default target),
    which fits under the 32 MiB scoped-VMEM limit set in CompilerParams.
    """
    per_unit = (cin * in_itemsize + out_itemsize) * _LANE   # bytes / sublane row
    units_cap = max(_SUBLANE, target_step_bytes // per_unit)

    if s_total <= units_cap:
        ts = s_total                                         # full spatial axis
    else:
        ts = max(_SUBLANE, (units_cap // _SUBLANE) * _SUBLANE)  # sublane-aligned

    tb = int(max(1, min(batch, units_cap // max(ts, 1))))

    # v7x has 2 TensorCores: keep >= 2 blocks along a "parallel" axis if we can.
    if _cdiv(batch, tb) * _cdiv(s_total, ts) < 2:
        if batch >= 2:
            tb = _cdiv(batch, 2)
        elif s_total > _SUBLANE:
            ts = max(_SUBLANE, _cdiv(_cdiv(s_total, 2), _SUBLANE) * _SUBLANE)
    return tb, ts


def image_prediction_generator_forward(x_nchw, w_oihw, bias, *,
                                       force_pallas=False):
    """Equivalent of Image_Prediction_Generator.forward: returns (x, gt_pre)."""
    B, Cin, H, W = x_nchw.shape
    Cout = w_oihw.shape[0]
    assert Cout == 1 and w_oihw.shape[1:] == (Cin, 1, 1), w_oihw.shape

    w_vec = w_oihw.reshape(Cin).astype(jnp.float32)   # w[0, :, 0, 0]
    b_vec = bias.reshape(1).astype(jnp.float32)

    # Tiny-problem bypass: for sub-MiB inputs the pallas_call launch and
    # per-step overhead dominate; XLA's fused elementwise path is faster.
    if (not force_pallas
            and x_nchw.size * x_nchw.dtype.itemsize < (1 << 20)):
        gt = jnp.einsum("bchw,c->bhw", x_nchw.astype(jnp.float32), w_vec) + b_vec[0]
        return x_nchw, gt[:, None, :, :].astype(x_nchw.dtype)

    HW = H * W
    s_total = _cdiv(HW, _LANE)
    hw_pad = s_total * _LANE

    # Flatten HW and split it as (S, 128): the lane axis is a dense 128 and the
    # output block is sublane-dense (TS rows x 128 lanes), so loads and stores
    # use fully packed, unmasked vregs.  Non-128-divisible HW is padded up (the
    # tail is sliced off below) instead of falling back to one un-tiled block.
    x3 = x_nchw.reshape(B, Cin, HW)
    if hw_pad != HW:
        x3 = jnp.pad(x3, ((0, 0), (0, 0), (0, hw_pad - HW)))
    x4 = x3.reshape(B, Cin, s_total, _LANE)

    itemsize = x_nchw.dtype.itemsize
    TB, TS = _choose_tiles(B, Cin, s_total, itemsize, itemsize)
    grid = (_cdiv(B, TB), _cdiv(s_total, TS))

    out4 = pl.pallas_call(
        _ipg_kernel,
        out_shape=jax.ShapeDtypeStruct((B, 1, s_total, _LANE), x_nchw.dtype),
        grid_spec=pltpu.PrefetchScalarGridSpec(
            num_scalar_prefetch=0,
            grid=grid,
            in_specs=[
                pl.BlockSpec((TB, Cin, TS, _LANE), lambda b, s: (b, 0, s, 0)),
                pl.BlockSpec(memory_space=pltpu.MemorySpace.SMEM),   # (Cin,) w
                pl.BlockSpec(memory_space=pltpu.MemorySpace.SMEM),   # (1,)   b
            ],
            out_specs=pl.BlockSpec((TB, 1, TS, _LANE), lambda b, s: (b, 0, s, 0)),
        ),
        compiler_params=pltpu.CompilerParams(
            dimension_semantics=("parallel", "parallel"),
            vmem_limit_bytes=32 * 1024 * 1024),
    )(x4, w_vec, b_vec)

    gt_pre = out4.reshape(B, 1, hw_pad)[:, :, :HW].reshape(B, 1, H, W)
    return x_nchw, gt_pre


def _reference_conv1x1(x, w, b):
    ref = jax.lax.conv_general_dilated(
        x.astype(jnp.float32), w.astype(jnp.float32),
        window_strides=(1, 1), padding="VALID",
        dimension_numbers=("NCHW", "OIHW", "NCHW"))
    return ref + b.astype(jnp.float32)[None, :, None, None]


if __name__ == "__main__":
    key = jax.random.PRNGKey(0)
    kx, kw, kb, kx2 = jax.random.split(key, 4)

    B, Cin, H, W = 2, 4, 16, 16
    Cout = 1

    x = jax.random.normal(kx, (B, Cin, H, W), dtype=jnp.float32)
    # PyTorch-like Conv2d default init: uniform(-1/sqrt(fan_in), 1/sqrt(fan_in))
    fan_in = Cin * 1 * 1
    bound = 1.0 / (fan_in ** 0.5)
    w = jax.random.uniform(kw, (Cout, Cin, 1, 1), dtype=jnp.float32,
                           minval=-bound, maxval=bound)
    b = jax.random.uniform(kb, (Cout,), dtype=jnp.float32,
                           minval=-bound, maxval=bound)

    # 1) Pallas path on the canonical small test shape.
    x_out, gt_pre = image_prediction_generator_forward(x, w, b, force_pallas=True)
    x_out, gt_pre = jax.block_until_ready((x_out, gt_pre))
    ref = _reference_conv1x1(x, w, b)
    assert gt_pre.shape == (B, Cout, H, W), gt_pre.shape
    assert jnp.allclose(gt_pre, ref, atol=1e-5, rtol=1e-5), \
        float(jnp.max(jnp.abs(gt_pre - ref)))
    assert jnp.array_equal(x_out, x)

    # 2) Pallas path where H*W is not a multiple of 128 (exercises padding).
    H2, W2 = 20, 20
    x2 = jax.random.normal(kx2, (B, Cin, H2, W2), dtype=jnp.float32)
    _, gt2 = jax.block_until_ready(
        image_prediction_generator_forward(x2, w, b, force_pallas=True))
    ref2 = _reference_conv1x1(x2, w, b)
    assert gt2.shape == (B, Cout, H2, W2), gt2.shape
    assert jnp.allclose(gt2, ref2, atol=1e-5, rtol=1e-5), \
        float(jnp.max(jnp.abs(gt2 - ref2)))

    # 3) Tiny-size fast path (XLA einsum bypass) agrees as well.
    _, gt3 = jax.block_until_ready(
        image_prediction_generator_forward(x, w, b))
    assert jnp.allclose(gt3, ref, atol=1e-5, rtol=1e-5)

    print("KERNEL_OK")
</pallas_src>

<mosaic_0001>
module attributes {stable_mosaic.version = 11 : i64} {
  func.func @_ipg_kernel(%arg0: i32, %arg1: i32, %arg2: memref<1x4x2x128xf32, #tpu.memory_space<vmem>>, %arg3: memref<4xf32, #tpu.memory_space<smem>>, %arg4: memref<1xf32, #tpu.memory_space<smem>>, %arg5: memref<1x1x2x128xf32, #tpu.memory_space<vmem>>) attributes {dimension_semantics = [#tpu.dimension_semantics<parallel>, #tpu.dimension_semantics<parallel>], iteration_bounds = array<i64: 2, 1>, scalar_prefetch = 0 : i64, scratch_operands = 0 : i64, tpu.core_type = #tpu.core_type<tc>, window_params = [{transform_indices = @transform_0, window_bounds = array<i64: 1, 4, 2, 128>}, {transform_indices = @transform_1, window_bounds = array<i64: 4>}, {transform_indices = @transform_2, window_bounds = array<i64: 1>}, {transform_indices = @transform_3, window_bounds = array<i64: 1, 1, 2, 128>}]} {
    %c0 = arith.constant 0 : index
    %c0_0 = arith.constant 0 : index
    %c0_1 = arith.constant 0 : index
    %c0_2 = arith.constant 0 : index
    %0 = vector.load %arg2[%c0, %c0_0, %c0_1, %c0_2] : memref<1x4x2x128xf32, #tpu.memory_space<vmem>>, vector<1x1x2x128xf32>
    %1 = vector.shape_cast %0 : vector<1x1x2x128xf32> to vector<1x2x128xf32>
    %c0_3 = arith.constant 0 : index
    %2 = memref.load %arg3[%c0_3] : memref<4xf32, #tpu.memory_space<smem>>
    %3 = vector.broadcast %2 : f32 to vector<1x2x128xf32>
    %4 = arith.mulf %1, %3 : vector<1x2x128xf32>
    %c0_4 = arith.constant 0 : index
    %c1 = arith.constant 1 : index
    %c0_5 = arith.constant 0 : index
    %c0_6 = arith.constant 0 : index
    %5 = vector.load %arg2[%c0_4, %c1, %c0_5, %c0_6] : memref<1x4x2x128xf32, #tpu.memory_space<vmem>>, vector<1x1x2x128xf32>
    %6 = vector.shape_cast %5 : vector<1x1x2x128xf32> to vector<1x2x128xf32>
    %c1_7 = arith.constant 1 : index
    %7 = memref.load %arg3[%c1_7] : memref<4xf32, #tpu.memory_space<smem>>
    %8 = vector.broadcast %7 : f32 to vector<1x2x128xf32>
    %9 = arith.mulf %6, %8 : vector<1x2x128xf32>
    %10 = arith.addf %4, %9 : vector<1x2x128xf32>
    %c0_8 = arith.constant 0 : index
    %c2 = arith.constant 2 : index
    %c0_9 = arith.constant 0 : index
    %c0_10 = arith.constant 0 : index
    %11 = vector.load %arg2[%c0_8, %c2, %c0_9, %c0_10] : memref<1x4x2x128xf32, #tpu.memory_space<vmem>>, vector<1x1x2x128xf32>
    %12 = vector.shape_cast %11 : vector<1x1x2x128xf32> to vector<1x2x128xf32>
    %c2_11 = arith.constant 2 : index
    %13 = memref.load %arg3[%c2_11] : memref<4xf32, #tpu.memory_space<smem>>
    %14 = vector.broadcast %13 : f32 to vector<1x2x128xf32>
    %15 = arith.mulf %12, %14 : vector<1x2x128xf32>
    %16 = arith.addf %10, %15 : vector<1x2x128xf32>
    %c0_12 = arith.constant 0 : index
    %c3 = arith.constant 3 : index
    %c0_13 = arith.constant 0 : index
    %c0_14 = arith.constant 0 : index
    %17 = vector.load %arg2[%c0_12, %c3, %c0_13, %c0_14] : memref<1x4x2x128xf32, #tpu.memory_space<vmem>>, vector<1x1x2x128xf32>
    %18 = vector.shape_cast %17 : vector<1x1x2x128xf32> to vector<1x2x128xf32>
    %c3_15 = arith.constant 3 : index
    %19 = memref.load %arg3[%c3_15] : memref<4xf32, #tpu.memory_space<smem>>
    %20 = vector.broadcast %19 : f32 to vector<1x2x128xf32>
    %21 = arith.mulf %18, %20 : vector<1x2x128xf32>
    %22 = arith.addf %16, %21 : vector<1x2x128xf32>
    %c0_16 = arith.constant 0 : index
    %23 = memref.load %arg4[%c0_16] : memref<1xf32, #tpu.memory_space<smem>>
    %24 = vector.broadcast %23 : f32 to vector<1x2x128xf32>
    %25 = arith.addf %22, %24 : vector<1x2x128xf32>
    %c0_17 = arith.constant 0 : index
    %c0_18 = arith.constant 0 : index
    %c0_19 = arith.constant 0 : index
    %c0_20 = arith.constant 0 : index
    %26 = vector.load %arg5[%c0_17, %c0_18, %c0_19, %c0_20] : memref<1x1x2x128xf32, #tpu.memory_space<vmem>>, vector<1x1x2x128xf32>
    %27 = vector.shape_cast %26 : vector<1x1x2x128xf32> to vector<1x2x128xf32>
    %28 = vector.shape_cast %25 : vector<1x2x128xf32> to vector<1x1x2x128xf32>
    tpu.vector_store %arg5[%c0_17, %c0_18, %c0_19, %c0_20], %28 {strides = array<i32>} : memref<1x1x2x128xf32, #tpu.memory_space<vmem>>, vector<1x1x2x128xf32>,
    return
  }
  func.func @transform_0(%arg0: i32, %arg1: i32) -> (i32, i32, i32, i32) {
    %c0_i32 = arith.constant 0 : i32
    %c0_i32_0 = arith.constant 0 : i32
    %c0_i32_1 = arith.constant 0 : i32
    return %arg0, %c0_i32, %arg1, %c0_i32_0 : i32, i32, i32, i32
  }
  func.func @transform_1(%arg0: i32, %arg1: i32) -> i32 {
    %c0_i32 = arith.constant 0 : i32
    %c0_i32_0 = arith.constant 0 : i32
    return %c0_i32 : i32
  }
  func.func @transform_2(%arg0: i32, %arg1: i32) -> i32 {
    %c0_i32 = arith.constant 0 : i32
    %c0_i32_0 = arith.constant 0 : i32
    return %c0_i32 : i32
  }
  func.func @transform_3(%arg0: i32, %arg1: i32) -> (i32, i32, i32, i32) {
    %c0_i32 = arith.constant 0 : i32
    %c0_i32_0 = arith.constant 0 : i32
    %c0_i32_1 = arith.constant 0 : i32
    return %arg0, %c0_i32, %arg1, %c0_i32_0 : i32, i32, i32, i32
  }
}

</mosaic_0001>

<bundles_post_ra>
// kernel: tpu_custom_call.1
= control target key start
LH: loop header
LB: loop body
LE: loop exit
PB: predicated region body
PF: predicated region fallthrough
CT: control target
= control target key end

     0   :  { %s825_s0 = inlined_call_operand.hbm [shape: f32[2,4,2,128], index: 0, kind: input, shape index: {}]   ;;  %s826_s1 = inlined_call_operand.vmem [shape: f32[4], index: 1, kind: input, shape index: {}]   ;;  %s827_s2 = inlined_call_operand.<no memory space> [shape: f32[1], index: 2, kind: input, shape index: {}]   ;;  %s828_s3 = inlined_call_operand.hbm [shape: f32[2,1,2,128], index: 3, kind: output, shape index: {}]  }
   0x1   :  { %8 = sst [smem:[#allocation2]] %s827_s2 }
   0x2   :  { %9 = vsyncpa [#allocation4], 0 }
   0x3   :  { %11 = vsyncpa [#allocation4 + $0x1], 0 }
   0x4   :  { %12 = vsyncpa [#allocation6], 0 }
   0x5   :  { %13 = vsyncpa [#allocation5], 0 }
   0x6   :  { %15 = vsyncpa [#allocation5 + $0x1], 0  ;;  %s614_s14 = smov 0   ;;  %s616_s15 = smov 0  }
   0x7   :  { %s618_s16 = smov 0   ;;  %s620_s17 = smov 0  }
   0x8   :  { %s622_s18 = smov 0   ;;  %s624_s19 = smov 0  }
   0x9 LB: > { %s355_s2 = sadd.s32 4294967295, %s584_s19   ;;  %s356_s20 = sadd.s32 4294967294, %s584_s19   ;;  %s584_s19 = sphi %s624_s19, %s21_s19   ;;  %s580_s18 = sphi %s622_s18, %s851_s18   ;;  %s576_s17 = sphi %s620_s17, %s850_s17   ;;  %s572_s16 = sphi %s618_s16, %s849_s16   ;;  %s568_s15 = sphi %s616_s15, %s848_s15   ;;  %s564_s14 = sphi %s614_s14, %s847_s14  }
   0xa   : > { %s42_s21 = sadd.s32 1, %s572_s16  ;;  %p49_p0 = scmp.ne.s32.totalorder %s572_s16, %s568_s15 }
   0xb   : > { %p50_p1 = scmp.eq.s32.totalorder %s584_s19, 0  ;;  %p55_p2 = scmp.ne.s32.totalorder %s568_s15, %s564_s14 }
   0xc   : > { %p652_p3 = scmp.eq.s32.totalorder %s355_s2, 0  ;;  %p123_p4 = scmp.eq.s32.totalorder %s355_s2, 1 }
   0xd   : > { %p656_p5 = por %p50_p1, %p49_p0  ;;  %p129_p6 = scmp.eq.s32.totalorder %s356_s20, 1 }
   0xe   : > { %s833_s22 = scalar_select %p652_p3, 1, 0 }
   0xf   : > { %p662_p7 = por %p652_p3, %p55_p2  ;;  %p666_p8 = por %p123_p4, %p49_p0 }
  0x10   : > { %p670_p9 = por %p129_p6, %p55_p2  ;;  %p357_p10 = scmp.ge.s32.totalorder %s584_s19, 1 }
  0x11   : > { %s835_s24 = scalar_select %p662_p7, 1, 0 }
  0x12   : > { %s836_s25 = scalar_select %p666_p8, 1, 0 }
  0x13   : > { %s837_s26 = scalar_select %p670_p9, 1, 0 }
  0x14   : > { %p136_p11 = scmp.lt.s32.totalorder %s584_s19, 3  ;;  %s149_s29 = sshll.u32 %s826_s1, 4  ;;  %s150_s29 = int_to_ptr.vmem [resolvable:$true] %s149_s29 }
  0x15   : > { %p399_p0 = scmp.lt.s32.totalorder %s584_s19, 2  ;;  %s33_s6 = sadd.s32 1, %s580_s18 }
  0x16   : > { %p679_p12 = pnand %p357_p10, %p136_p11  ;;  %p700_p6 = scmp.ge.s32.totalorder %s33_s6, 2 }
  0x17   : > { %p689_p2 = pnand %p399_p0, %p656_p5  ;;  %s163_s8 = sand.u32 1, %s572_s16  }
  0x18   : > { %p386_p1 = pneg %p679_p12  ;;  %s453_s9 = scalar_lea.vmem %s150_s29, 16 }
  0x19   : > { %p454_p10 = scmp.ne.s32.totalorder %s150_s29, %s453_s9  ;;  %p461_p13 = scmp.lt.s32.totalorder %s150_s29, %s150_s29 }
  0x1a   : > { %p695_p4 = pnand %p386_p1, %p652_p3  ;;  %p462_p9 = scmp.lt.s32.totalorder %s453_s9, %s453_s9 }
  0x1c   : > { %p455_p11 = pneg %p695_p4  ;;  %p463_p8 = por %p462_p9, %p461_p13 }
  0x1e   : > { %p456_p5 = pnand %p455_p11, %p454_p10 }
  0x20   : > { %p457_p0 = pneg %p456_p5 }
  0x22   : > { %p464_p1 = pnand %p463_p8, %p457_p0 }
  0x24   : > { %467 = shalt.err (!%p464_p1)
}
  0x25   : > { %s586_s10 = smov [#allocation7]   ;;  %s853_s6 = smov (%p700_p6, %s33_s6), 0 }
  0x26   : > { %389 = dma.vmem_to_smem (!%p695_p4), %s150_s29, 16, %s586_s10, [#allocation6]  }
  0x27   : > { %s360_s11 = sshll.u32 %s163_s8, 3  ;;  %s37_s12 = ssub.s32 %s580_s18, %s853_s6 }
  0x28   : > { %p40_p9 = scmp.eq.s32.totalorder %s37_s12, 0  ;;  %s377_s13 = sshll.u32 %s580_s18, 7 }
  0x29   : > { %s719_s23 = scalar_lea.hbm %s825_s0, %s377_s13  ;;  %s167_s27 = scalar_lea.vmem [#allocation3], %s360_s11 }
  0x2a   : > { %s175_s28 = sshll.u32 %s167_s27, 4  ;;  %s728_s5 = scalar_lea.sflag [#allocation4], %s163_s8  ;;  %s726_s28 = int_to_ptr.vmem [resolvable:$true] %s175_s28 }
  0x2b   : > { %s724_s29 = scalar_select %p40_p9, %s572_s16, %s42_s21  }
  0x2c   : > { %s468_s7 = scalar_lea.hbm %s719_s23, 128  ;;  %p470_p13 = pneg %p689_p2 }
  0x2d   : > { %p469_p8 = scmp.ne.s32.totalorder %s719_s23, %s468_s7  ;;  %s473_s11 = scalar_lea.hbm %s825_s0, 256 }
  0x2e   : > { %p474_p10 = scmp.lt.u32.totalorder %s719_s23, %s825_s0  ;;  %p475_p11 = scmp.lt.u32.totalorder %s473_s11, %s468_s7 }
  0x2f   : > { %p471_p4 = pnand %p470_p13, %p469_p8  ;;  %p477_p0 = scmp.lt.u32.totalorder %s468_s7, %s719_s23 }
  0x30   : > { %p476_p5 = por %p475_p11, %p474_p10 }
  0x31   : > { %p472_p6 = pneg %p471_p4 }
  0x32   : > { %p478_p1 = por %p477_p0, %p476_p5 }
  0x34   : > { %p479_p9 = pnand %p478_p1, %p472_p6 }
  0x36   : > { %482 = shalt.err (!%p479_p9)
}
  0x37   : > { %s483_s21 = scalar_lea.vmem %s726_s28, 128  ;;  %s587_s8 = smov [#allocation3]  }
  0x38   : > { %p484_p8 = scmp.ne.s32.totalorder %s726_s28, %s483_s21  ;;  %s488_s2 = sshll.u32 %s587_s8, 4  ;;  %s489_s2 = int_to_ptr.vmem [resolvable:$false] %s488_s2 }
  0x39   : > { %s490_s20 = scalar_lea.vmem %s489_s2, 256  ;;  %p491_p7 = scmp.lt.s32.totalorder %s726_s28, %s489_s2 }
  0x3a   : > { %p486_p4 = pnand %p484_p8, %p470_p13  ;;  %p492_p10 = scmp.lt.s32.totalorder %s490_s20, %s483_s21 }
  0x3c   : > { %p487_p3 = pneg %p486_p4  ;;  %p493_p11 = por %p492_p10, %p491_p7 }
  0x3e   : > { %p494_p5 = pnand %p493_p11, %p487_p3 }
  0x40   : > { %497 = shalt.err (!%p494_p5)
}
  0x41   : > { %s588_s27 = smov 32   ;;  %s589_s7 = smov 2  }
  0x42   : > { %393 = dma.hbm_to_vmem [thread:$0]  (!%p689_p2), %s719_s23, 128, %s726_s28, %s728_s5, %s588_s27, %s588_s27, %s589_s7  }
  0x43   : > { %187 = sbr.rel (%p679_p12) target bundleno = 111 (0x6f), region = 32  ;;  %s759_s9 = sand.u32 (!%p679_p12), 1, %s568_s15  }
  0x44   : > { %s364_s10 = sshll.u32 (!%p679_p12), %s759_s9, 3  ;;  %s190_s11 = scalar_lea.sflag (!%p679_p12), [#allocation4], %s759_s9 }
  0x45   : > { %s193_s12 = scalar_lea.vmem (!%p679_p12), [#allocation3], %s364_s10  ;;  %p842_p3 = scmp.ne.s32.totalorder (!%p679_p12), %s835_s24, 0 }
  0x4a   : > { %551 = dma.done.wait (%p842_p3), %s190_s11, 128  }
  0x4b   : > { %553 = vsyncadd (%p842_p3), %s190_s11, 4294967168  ;;  %p843_p7 = scmp.ne.s32.totalorder %s833_s22, 0 }
  0x4d   : > { %555 = dma.done.wait (%p843_p7), [#allocation6], 16  }
  0x4e   : > { %557 = vsyncadd (%p843_p7), [#allocation6], 4294967280 }
  0x4f   : > { %202 = sfence }
  0x50   : > { %s222_s30 = sld [smem:[#allocation7]]  ;;  %s368_s4 = sld [smem:[#allocation7 + $0x1]]  ;;  %v221_v0 = vld [vmem:[%s193_s12] sm:$0x3]  ;;  %v367_v1 = vld [vmem:[%s193_s12 + $0x2] sm:$0x3] }
  0x51   : > { %s370_s23 = sld [smem:[#allocation7 + $0x2]]  ;;  %s372_s28 = sld [smem:[#allocation7 + $0x3]]  ;;  %v369_v3 = vld [vmem:[%s193_s12 + $0x4] sm:$0x3]  ;;  %v371_v6 = vld [vmem:[%s193_s12 + $0x6] sm:$0x3] }
  0x52   : > { %s243_s5 = sld [smem:[#allocation2]]  ;;  %s366_s24 = sshll.u32 %s759_s9, 1 }
  0x53   : > { %s220_s22 = scalar_lea.vmem [#allocation8], %s366_s24  ;;  %s374_s21 = sshll.u32 %s576_s17, 5 }
  0x54   : > { %s262_s13 = sshll.u32 %s220_s22, 4  ;;  %s778_s20 = scalar_lea.hbm %s828_s3, %s374_s21  ;;  %s773_s13 = int_to_ptr.vmem [resolvable:$true] %s262_s13 }
  0x55   : > { %s248_s27 = scalar_lea.sflag [#allocation5], %s759_s9  ;;  %s498_s7 = scalar_lea.vmem %s773_s13, 32 }
  0x56   : > { %v223_v2 = vstv %s222_s30  ;;  %v228_v5 = vstv %s368_s4  ;;  %p499_p12 = scmp.ne.s32.totalorder %s773_s13, %s498_s7  ;;  %p844_p2 = scmp.ne.s32.totalorder %s836_s25, 0 }
  0x57   : > { %v224_v4 = vmul.f32 %v223_v2, %v221_v0  ;;  %v229_v7 = vmul.f32 %v367_v1, %v228_v5  ;;  %v234_v8 = vstv %s370_s23  ;;  %v240_v10 = vstv %s372_s28  ;;  %s590_s17 = smov [#allocation8]  }
  0x58   : > { %v235_v9 = vmul.f32 %v369_v3, %v234_v8  ;;  %v241_v12 = vmul.f32 %v371_v6, %v240_v10  ;;  %v244_v14 = vstv %s243_s5  ;;  %p500_p13 = pnand %p499_p12, %p844_p2  ;;  %s502_s10 = sshll.u32 %s590_s17, 4  ;;  %s503_s10 = int_to_ptr.vmem [resolvable:$false] %s502_s10 }
  0x59   : > { %v230_v11 = vadd.f32 %v229_v7, %v224_v4  ;;  %s504_s11 = scalar_lea.vmem %s503_s10, 64  ;;  %p505_p0 = scmp.lt.s32.totalorder %s773_s13, %s503_s10 }
  0x5a   : > { %p501_p6 = pneg %p500_p13  ;;  %p506_p1 = scmp.lt.s32.totalorder %s504_s11, %s498_s7 }
  0x5b   : > { %v236_v13 = vadd.f32 %v235_v9, %v230_v11 }
  0x5c   : > { %p507_p9 = por %p506_p1, %p505_p0 }
  0x5d   : > { %v242_v15 = vadd.f32 %v241_v12, %v236_v13 }
  0x5e   : > { %p508_p8 = pnand %p507_p9, %p501_p6 }
  0x5f   : > { %v245_v16 = vadd.f32 %v244_v14, %v242_v15 }
  0x61   : > { %246 = vst [vmem:[%s220_s22] sm:$0x3] %v245_v16 }
  0x62   : > { %511 = shalt.err (!%p508_p8)
}
  0x63   : > { %s512_s9 = scalar_lea.hbm %s778_s20, 32  ;;  %s516_s4 = scalar_lea.hbm %s828_s3, 64 }
  0x64   : > { %p513_p4 = scmp.ne.s32.totalorder %s778_s20, %s512_s9  ;;  %p517_p5 = scmp.lt.u32.totalorder %s778_s20, %s828_s3 }
  0x65   : > { %p518_p3 = scmp.lt.u32.totalorder %s516_s4, %s512_s9  ;;  %p520_p12 = scmp.lt.u32.totalorder %s512_s9, %s778_s20 }
  0x66   : > { %p514_p10 = pnand %p513_p4, %p844_p2 }
  0x67   : > { %p519_p7 = por %p518_p3, %p517_p5 }
  0x68   : > { %p515_p11 = pneg %p514_p10 }
  0x69   : > { %p521_p13 = por %p520_p12, %p519_p7 }
  0x6b   : > { %p522_p6 = pnand %p521_p13, %p515_p11 }
  0x6d   : > { %525 = shalt.err (!%p522_p6)
}
  0x6e   : > { %384 = dma.vmem_to_hbm [thread:$0]  (%p844_p2), %s773_s13, 32, %s778_s20, %s248_s27  }
  0x6f PF: > { %s274_s5 = sand.u32 1, %s564_s14   ;;  %p845_p0 = scmp.ne.s32.totalorder %s837_s26, 0 }
  0x70   : > { %p846_p1 = scmp.ge.s32.totalorder %s584_s19, 2  ;;  %s275_s24 = scalar_lea.sflag [#allocation5], %s274_s5 }
  0x72   : > { %p395_p9 = pnand %p846_p1, %p845_p0 }
  0x74   : > { %559 = dma.done.wait (!%p395_p9), %s275_s24, 32  }
  0x75   : > { %561 = vsyncadd (!%p395_p9), %s275_s24, 4294967264  ;;  %s21_s19 = sadd.s32 1, %s584_s19   ;;  %s847_s14 = smov %s568_s15 }
  0x76   : > { %p18_p8 = scmp.ge.s32.totalorder %s21_s19, 4   ;;  %s848_s15 = smov %s572_s16 }
  0x77   : > { %s849_s16 = smov %s724_s29  ;;  %s850_s17 = smov %s580_s18 }
  0x78   : > { %s851_s18 = smov %s853_s6  ;;  %20 = sbr.rel (!%p18_p8) target bundleno = 9 (0x9), region = 85 }
  0x7f   :  { %280 = vsyncpa [#allocation4], 1 }
  0x80   :  { %282 = vsyncpa [#allocation4 + $0x1], 1 }
  0x81   :  { %283 = vsyncpa [#allocation5], 1 }
  0x82   :  { %285 = vsyncpa [#allocation5 + $0x1], 1 }
  0x83   :  { %286 = vsyncpa [#allocation6], 1 }
  0x84   :  { %288 = vsyncpa [#allocation6 + $0x1], 1 }

</bundles_post_ra>
